<compile_context>
chip_gen: v5e
topology: v5e:2x2
jax: 0.10.0
libtpu: 0.0.40
codegen_flags: <defaults>
</compile_context>

<pallas_src>
import functools

import jax
import jax.numpy as jnp
from jax import lax
from jax.experimental import pallas as pl
from jax.experimental.pallas import tpu as pltpu


def _channel_attention_kernel(x_ref, w1_ref, b1_ref, w2_ref, b2_ref, out_ref,
                              sum_scr, max_scr, *,
                              inv_hw, tail_valid, need_mask):
    hw_step = pl.program_id(1)
    n_hw = pl.num_programs(1)

    x = x_ref[...]                                   # (Nb, C, hw_tile), native dtype

    # ---- init running accumulators on the first HW step ----------------------
    @pl.when(hw_step == 0)
    def _():
        sum_scr[...] = jnp.zeros_like(sum_scr)
        max_scr[...] = jnp.full_like(max_scr, -jnp.inf)

    def _accumulate(xs, xm):
        # Sum widened to f32 only inside the reduction; max reduces in the
        # native dtype and only the (Nb, C) result is widened.
        sum_scr[...] = sum_scr[...] + jnp.sum(xs, axis=-1, dtype=jnp.float32)
        max_scr[...] = jnp.maximum(max_scr[...],
                                   jnp.max(xm, axis=-1).astype(jnp.float32))

    if need_mask:
        # Padding only exists on the very last HW tile; keep every other step
        # on the cheap unmasked path.
        @pl.when(hw_step < n_hw - 1)
        def _():
            _accumulate(x, x)

        @pl.when(hw_step == n_hw - 1)
        def _():
            col = lax.broadcasted_iota(jnp.int32, x.shape, 2)
            ok = col < tail_valid
            xs = jnp.where(ok, x, jnp.zeros((), x.dtype))
            xm = jnp.where(ok, x, jnp.full((), -jnp.inf, x.dtype))
            _accumulate(xs, xm)
    else:
        _accumulate(x, x)

    # ---- epilogue: shared MLP + sigmoid, once per batch group ----------------
    @pl.when(hw_step == n_hw - 1)
    def _():
        nb = sum_scr.shape[0]
        avg = sum_scr[...] * inv_hw                  # true-HW mean
        mx = max_scr[...]

        pooled = jnp.concatenate([avg, mx], axis=0)  # (2*Nb, C)

        w1 = w1_ref[...].astype(jnp.float32)         # (C, hidden)
        b1 = b1_ref[...].astype(jnp.float32)         # (1, hidden)
        w2 = w2_ref[...].astype(jnp.float32)         # (hidden, C)
        b2 = b2_ref[...].astype(jnp.float32)         # (1, C)

        h = jnp.dot(pooled, w1, preferred_element_type=jnp.float32) + b1
        h = jnp.maximum(h, 0.0)                      # ReLU
        y = jnp.dot(h, w2, preferred_element_type=jnp.float32) + b2

        attn = jax.nn.sigmoid(y[:nb] + y[nb:])       # (Nb, C)
        out_ref[...] = attn.astype(out_ref.dtype)


def _vmem_capacity_bytes():
    try:
        info = pltpu.get_tpu_info()
        cap = getattr(info, "vmem_capacity_bytes", None)
        if cap:
            return int(cap)
    except Exception:
        pass
    return 64 * 1024 * 1024          # conservative default: v7x physical VMEM


def _pick_nb(n, min_groups):
    """Largest divisor nb of n such that n // nb >= min_groups (else 1)."""
    best = 1
    for nb in range(1, n + 1):
        if n % nb == 0 and n // nb >= min_groups:
            best = nb
    return best


def channel_attention(x_nchw, w1, b1, w2, b2, *, block_budget_bytes=None):
    """x_nchw: (N, C, H, W). Returns (N, C, 1, 1) like the PyTorch module.

    w1: (C, hidden), b1: (hidden,), w2: (hidden, C), b2: (C,) -- the 1x1-conv
    weights stored transposed so the kernel computes p @ w1 / h @ w2.
    """
    N, C, H, W = x_nchw.shape
    HW = H * W
    hidden = w1.shape[1]

    x = x_nchw.reshape(N, C, HW)                 # free contiguous view of NCHW
    b1_2d = b1.reshape(1, hidden)
    b2_2d = b2.reshape(1, C)

    # ---- generation-aware VMEM budget ----------------------------------------
    vmem_cap = _vmem_capacity_bytes()
    # Leave ~16 MiB headroom below physical VMEM (critical on v7x's 64 MiB).
    vmem_limit = max(32 * 1024 * 1024, vmem_cap - 16 * 1024 * 1024)
    vmem_limit = min(vmem_limit, vmem_cap)
    if block_budget_bytes is None:
        # x blocks are double-buffered; weights / biases / output / scratch are tiny.
        block_budget_bytes = max(1 * 1024 * 1024, vmem_limit // 2 - 2 * 1024 * 1024)

    itemsize = x.dtype.itemsize
    row_bytes = C * itemsize

    # ---- pick Nb (batch items per step) and hw_tile ---------------------------
    min_groups = 4 if N >= 4 else (2 if N >= 2 else 1)   # keep both v7x TCs busy
    nb = _pick_nb(N, min_groups)

    def _hw_tile_for(nb_):
        if nb_ * row_bytes * HW <= block_budget_bytes:
            return HW
        t = (block_budget_bytes // (nb_ * row_bytes)) // 128 * 128
        return max(int(t), 128)

    hw_tile = _hw_tile_for(nb)
    # Prefer wide contiguous rows (>= 512 lanes) over a larger Nb: strided-DMA
    # descriptor overhead dominates below ~512-lane rows.
    while nb > 1 and hw_tile < min(512, HW):
        nb2 = nb - 1
        while N % nb2 != 0:
            nb2 -= 1
        nb = nb2
        hw_tile = _hw_tile_for(nb)

    if hw_tile < HW:
        # Snap hw_tile to a multiple of 128 that divides HW (if one exists in a
        # reasonable range) so the ragged-tail mask disappears entirely.
        floor_t = max(128, (hw_tile // 2) // 128 * 128)
        t = hw_tile
        while t >= floor_t:
            if HW % t == 0:
                hw_tile = t
                break
            t -= 128

    n_hw = pl.cdiv(HW, hw_tile)
    need_mask = (HW % hw_tile) != 0
    tail_valid = HW - (n_hw - 1) * hw_tile       # valid lanes in the last tile

    kernel = functools.partial(
        _channel_attention_kernel,
        inv_hw=1.0 / float(HW), tail_valid=tail_valid, need_mask=need_mask)

    n_groups = N // nb

    out = pl.pallas_call(
        kernel,
        out_shape=jax.ShapeDtypeStruct((n_groups, nb, C), x_nchw.dtype),
        grid_spec=pltpu.PrefetchScalarGridSpec(
            num_scalar_prefetch=0,
            grid=(n_groups, n_hw),
            in_specs=[
                pl.BlockSpec((nb, C, hw_tile), lambda n, s: (n, 0, s)),
                pl.BlockSpec((C, hidden), lambda n, s: (0, 0)),
                pl.BlockSpec((1, hidden), lambda n, s: (0, 0)),
                pl.BlockSpec((hidden, C), lambda n, s: (0, 0)),
                pl.BlockSpec((1, C), lambda n, s: (0, 0)),
            ],
            # (groups, Nb, C) output: last two block dims are full-extent, so
            # stores stay clean for any Nb (no (8,128) sublane issue).
            out_specs=pl.BlockSpec((None, nb, C), lambda n, s: (n, 0, 0)),
            scratch_shapes=[
                pltpu.VMEM((nb, C), jnp.float32),   # running sum
                pltpu.VMEM((nb, C), jnp.float32),   # running max
            ],
        ),
        compiler_params=pltpu.CompilerParams(
            dimension_semantics=("parallel", "arbitrary"),
            vmem_limit_bytes=int(vmem_limit)),
    )(x, w1, b1_2d, w2, b2_2d)

    return out.reshape(N, C, 1, 1)


def reference(x_nchw, w1, b1, w2, b2):
    """Pure-JAX reference matching the PyTorch forward."""
    avg = jnp.mean(x_nchw, axis=(2, 3))          # (N, C)
    mx = jnp.max(x_nchw, axis=(2, 3))            # (N, C)

    def mlp(p):
        h = jnp.maximum(p @ w1 + b1, 0.0)
        return h @ w2 + b2

    return jax.nn.sigmoid(mlp(avg) + mlp(mx)).reshape(*x_nchw.shape[:2], 1, 1)


if __name__ == "__main__":
    key = jax.random.PRNGKey(0)
    kx, k1, k2, k3, k4, kx2 = jax.random.split(key, 6)

    # --- Test 1: small shape consistent with the module (single-HW-step path).
    N, C, H, W = 2, 32, 16, 16
    ratio = 4
    hidden = C // ratio

    x = jax.random.normal(kx, (N, C, H, W), dtype=jnp.float32)
    # Conv2d 1x1 weights squeezed to matrices, stored transposed for p @ w.
    w1 = jax.random.normal(k1, (C, hidden), dtype=jnp.float32) * 0.1
    b1 = jax.random.normal(k2, (hidden,), dtype=jnp.float32) * 0.1
    w2 = jax.random.normal(k3, (hidden, C), dtype=jnp.float32) * 0.1
    b2 = jax.random.normal(k4, (C,), dtype=jnp.float32) * 0.1

    out = jax.block_until_ready(channel_attention(x, w1, b1, w2, b2))
    ref = reference(x, w1, b1, w2, b2)
    assert out.shape == (N, C, 1, 1)
    assert jnp.allclose(out, ref, atol=1e-5, rtol=1e-5), "mismatch vs reference (test 1)"

    # --- Test 2: force HW tiling + last-step ragged-tail masking
    # (HW = 324 with a tiny forced block budget -> tiles of 256 + masked 68).
    H2 = W2 = 18
    x2 = jax.random.normal(kx2, (N, C, H2, W2), dtype=jnp.float32)
    out2 = jax.block_until_ready(
        channel_attention(x2, w1, b1, w2, b2, block_budget_bytes=32 * 1024))
    ref2 = reference(x2, w1, b1, w2, b2)
    assert jnp.allclose(out2, ref2, atol=1e-5, rtol=1e-5), "mismatch vs reference (test 2)"

    print("KERNEL_OK")
</pallas_src>

<mosaic_0001>
module attributes {stable_mosaic.version = 11 : i64} {
  func.func @_channel_attention_kernel(%arg0: i32, %arg1: i32, %arg2: memref<1x32x256xf32, #tpu.memory_space<vmem>>, %arg3: memref<32x8xf32, #tpu.memory_space<vmem>>, %arg4: memref<1x8xf32, #tpu.memory_space<vmem>>, %arg5: memref<8x32xf32, #tpu.memory_space<vmem>>, %arg6: memref<1x32xf32, #tpu.memory_space<vmem>>, %arg7: memref<1x1x32xf32, #tpu.memory_space<vmem>>, %arg8: memref<1x32xf32, #tpu.memory_space<vmem>>, %arg9: memref<1x32xf32, #tpu.memory_space<vmem>>) attributes {dimension_semantics = [#tpu.dimension_semantics<parallel>, #tpu.dimension_semantics<arbitrary>], iteration_bounds = array<i64: 2, 1>, scalar_prefetch = 0 : i64, scratch_operands = 2 : i64, tpu.core_type = #tpu.core_type<tc>, window_params = [{transform_indices = @transform_0, window_bounds = array<i64: 1, 32, 256>}, {pipeline_mode = #tpu.pipeline_mode<synchronous>, transform_indices = @transform_1, window_bounds = array<i64: 32, 8>}, {pipeline_mode = #tpu.pipeline_mode<synchronous>, transform_indices = @transform_2, window_bounds = array<i64: 1, 8>}, {pipeline_mode = #tpu.pipeline_mode<synchronous>, transform_indices = @transform_3, window_bounds = array<i64: 8, 32>}, {pipeline_mode = #tpu.pipeline_mode<synchronous>, transform_indices = @transform_4, window_bounds = array<i64: 1, 32>}, {transform_indices = @transform_5, window_bounds = array<i64: 1, 1, 32>}]} {
    %c0 = arith.constant 0 : index
    %c0_0 = arith.constant 0 : index
    %c0_1 = arith.constant 0 : index
    %0 = vector.load %arg2[%c0, %c0_0, %c0_1] : memref<1x32x256xf32, #tpu.memory_space<vmem>>, vector<1x32x256xf32>
    %c0_i32 = arith.constant 0 : i32
    %1 = arith.cmpi eq, %arg1, %c0_i32 : i32
    %2 = arith.extui %1 : i1 to i32
    %c0_i32_2 = arith.constant 0 : i32
    %3 = arith.cmpi ne, %2, %c0_i32_2 : i32
    scf.if %3 {
      %cst_14 = arith.constant 0.000000e+00 : f32
      %15 = vector.broadcast %cst_14 : f32 to vector<1x32xf32>
      %c0_15 = arith.constant 0 : index
      %c0_16 = arith.constant 0 : index
      %16 = vector.load %arg8[%c0_15, %c0_16] : memref<1x32xf32, #tpu.memory_space<vmem>>, vector<1x32xf32>
      tpu.vector_store %arg8[%c0_15, %c0_16], %15 {strides = array<i32>} : memref<1x32xf32, #tpu.memory_space<vmem>>, vector<1x32xf32>,
      %cst_17 = arith.constant 0xFF800000 : f32
      %17 = vector.broadcast %cst_17 : f32 to vector<1x32xf32>
      %c0_18 = arith.constant 0 : index
      %c0_19 = arith.constant 0 : index
      %18 = vector.load %arg9[%c0_18, %c0_19] : memref<1x32xf32, #tpu.memory_space<vmem>>, vector<1x32xf32>
      tpu.vector_store %arg9[%c0_18, %c0_19], %17 {strides = array<i32>} : memref<1x32xf32, #tpu.memory_space<vmem>>, vector<1x32xf32>,
    } else {
    }
    %c0_3 = arith.constant 0 : index
    %c0_4 = arith.constant 0 : index
    %4 = vector.load %arg8[%c0_3, %c0_4] : memref<1x32xf32, #tpu.memory_space<vmem>>, vector<1x32xf32>
    %cst = arith.constant dense<0.000000e+00> : vector<1x32xf32>
    %5 = vector.multi_reduction <add>, %0, %cst [2] : vector<1x32x256xf32> to vector<1x32xf32>
    %6 = arith.addf %4, %5 : vector<1x32xf32>
    %c0_5 = arith.constant 0 : index
    %c0_6 = arith.constant 0 : index
    %7 = vector.load %arg8[%c0_5, %c0_6] : memref<1x32xf32, #tpu.memory_space<vmem>>, vector<1x32xf32>
    tpu.vector_store %arg8[%c0_5, %c0_6], %6 {strides = array<i32>} : memref<1x32xf32, #tpu.memory_space<vmem>>, vector<1x32xf32>,
    %c0_7 = arith.constant 0 : index
    %c0_8 = arith.constant 0 : index
    %8 = vector.load %arg9[%c0_7, %c0_8] : memref<1x32xf32, #tpu.memory_space<vmem>>, vector<1x32xf32>
    %cst_9 = arith.constant dense<0xFF800000> : vector<1x32xf32>
    %9 = vector.multi_reduction <maximumf>, %0, %cst_9 [2] : vector<1x32x256xf32> to vector<1x32xf32>
    %10 = arith.maximumf %8, %9 : vector<1x32xf32>
    %c0_10 = arith.constant 0 : index
    %c0_11 = arith.constant 0 : index
    %11 = vector.load %arg9[%c0_10, %c0_11] : memref<1x32xf32, #tpu.memory_space<vmem>>, vector<1x32xf32>
    tpu.vector_store %arg9[%c0_10, %c0_11], %10 {strides = array<i32>} : memref<1x32xf32, #tpu.memory_space<vmem>>, vector<1x32xf32>,
    %c0_i32_12 = arith.constant 0 : i32
    %12 = arith.cmpi eq, %arg1, %c0_i32_12 : i32
    %13 = arith.extui %12 : i1 to i32
    %c0_i32_13 = arith.constant 0 : i32
    %14 = arith.cmpi ne, %13, %c0_i32_13 : i32
    scf.if %14 {
      %c0_14 = arith.constant 0 : index
      %c0_15 = arith.constant 0 : index
      %15 = vector.load %arg8[%c0_14, %c0_15] : memref<1x32xf32, #tpu.memory_space<vmem>>, vector<1x32xf32>
      %cst_16 = arith.constant 3.906250e-03 : f32
      %16 = vector.broadcast %cst_16 : f32 to vector<1x32xf32>
      %17 = arith.mulf %15, %16 : vector<1x32xf32>
      %c0_17 = arith.constant 0 : index
      %c0_18 = arith.constant 0 : index
      %18 = vector.load %arg9[%c0_17, %c0_18] : memref<1x32xf32, #tpu.memory_space<vmem>>, vector<1x32xf32>
      %19 = tpu.concatenate %17, %18 in 0 : vector<1x32xf32>, vector<1x32xf32> -> vector<2x32xf32>
      %c0_19 = arith.constant 0 : index
      %c0_20 = arith.constant 0 : index
      %20 = vector.load %arg3[%c0_19, %c0_20] : memref<32x8xf32, #tpu.memory_space<vmem>>, vector<32x8xf32>
      %c0_21 = arith.constant 0 : index
      %c0_22 = arith.constant 0 : index
      %21 = vector.load %arg4[%c0_21, %c0_22] : memref<1x8xf32, #tpu.memory_space<vmem>>, vector<1x8xf32>
      %c0_23 = arith.constant 0 : index
      %c0_24 = arith.constant 0 : index
      %22 = vector.load %arg5[%c0_23, %c0_24] : memref<8x32xf32, #tpu.memory_space<vmem>>, vector<8x32xf32>
      %c0_25 = arith.constant 0 : index
      %c0_26 = arith.constant 0 : index
      %23 = vector.load %arg6[%c0_25, %c0_26] : memref<1x32xf32, #tpu.memory_space<vmem>>, vector<1x32xf32>
      %cst_27 = arith.constant dense<0.000000e+00> : vector<2x8xf32>
      %24 = tpu.matmul %19, %20, %cst_27 {dimension_numbers = #tpu.dot_dimension_numbers<[1], [0], [0], [1], [0, 0, 1, 1], [], []>} : vector<2x32xf32>, vector<32x8xf32>, vector<2x8xf32> -> vector<2x8xf32>
      %25 = vector.broadcast %21 : vector<1x8xf32> to vector<2x8xf32>
      %26 = arith.addf %24, %25 : vector<2x8xf32>
      %cst_28 = arith.constant 0.000000e+00 : f32
      %27 = vector.broadcast %cst_28 : f32 to vector<2x8xf32>
      %28 = arith.maximumf %26, %27 : vector<2x8xf32>
      %cst_29 = arith.constant dense<0.000000e+00> : vector<2x32xf32>
      %29 = tpu.matmul %28, %22, %cst_29 {dimension_numbers = #tpu.dot_dimension_numbers<[1], [0], [0], [1], [0, 0, 1, 1], [], []>} : vector<2x8xf32>, vector<8x32xf32>, vector<2x32xf32> -> vector<2x32xf32>
      %30 = vector.broadcast %23 : vector<1x32xf32> to vector<2x32xf32>
      %31 = arith.addf %29, %30 : vector<2x32xf32>
      %32 = vector.extract_strided_slice %31 {offsets = [0, 0], sizes = [1, 32], strides = [1, 1]} : vector<2x32xf32> to vector<1x32xf32>
      %33 = vector.extract_strided_slice %31 {offsets = [1, 0], sizes = [1, 32], strides = [1, 1]} : vector<2x32xf32> to vector<1x32xf32>
      %34 = arith.addf %32, %33 : vector<1x32xf32>
      %35 = arith.negf %34 : vector<1x32xf32>
      %36 = math.exp %35 : vector<1x32xf32>
      %cst_30 = arith.constant 1.000000e+00 : f32
      %37 = vector.broadcast %cst_30 : f32 to vector<1x32xf32>
      %38 = arith.addf %37, %36 : vector<1x32xf32>
      %39 = arith.divf %37, %38 : vector<1x32xf32>
      %c0_31 = arith.constant 0 : index
      %c0_32 = arith.constant 0 : index
      %c0_33 = arith.constant 0 : index
      %40 = vector.load %arg7[%c0_31, %c0_32, %c0_33] : memref<1x1x32xf32, #tpu.memory_space<vmem>>, vector<1x1x32xf32>
      %41 = vector.shape_cast %40 : vector<1x1x32xf32> to vector<1x32xf32>
      %42 = vector.shape_cast %39 : vector<1x32xf32> to vector<1x1x32xf32>
      tpu.vector_store %arg7[%c0_31, %c0_32, %c0_33], %42 {strides = array<i32>} : memref<1x1x32xf32, #tpu.memory_space<vmem>>, vector<1x1x32xf32>,
    } else {
    }
    return
  }
  func.func @transform_0(%arg0: i32, %arg1: i32) -> (i32, i32, i32) {
    %c0_i32 = arith.constant 0 : i32
    %c0_i32_0 = arith.constant 0 : i32
    return %arg0, %c0_i32, %arg1 : i32, i32, i32
  }
  func.func @transform_1(%arg0: i32, %arg1: i32) -> (i32, i32) {
    %c0_i32 = arith.constant 0 : i32
    %c0_i32_0 = arith.constant 0 : i32
    %c0_i32_1 = arith.constant 0 : i32
    return %c0_i32, %c0_i32_0 : i32, i32
  }
  func.func @transform_2(%arg0: i32, %arg1: i32) -> (i32, i32) {
    %c0_i32 = arith.constant 0 : i32
    %c0_i32_0 = arith.constant 0 : i32
    %c0_i32_1 = arith.constant 0 : i32
    return %c0_i32, %c0_i32_0 : i32, i32
  }
  func.func @transform_3(%arg0: i32, %arg1: i32) -> (i32, i32) {
    %c0_i32 = arith.constant 0 : i32
    %c0_i32_0 = arith.constant 0 : i32
    %c0_i32_1 = arith.constant 0 : i32
    return %c0_i32, %c0_i32_0 : i32, i32
  }
  func.func @transform_4(%arg0: i32, %arg1: i32) -> (i32, i32) {
    %c0_i32 = arith.constant 0 : i32
    %c0_i32_0 = arith.constant 0 : i32
    %c0_i32_1 = arith.constant 0 : i32
    return %c0_i32, %c0_i32_0 : i32, i32
  }
  func.func @transform_5(%arg0: i32, %arg1: i32) -> (i32, i32, i32) {
    %c0_i32 = arith.constant 0 : i32
    %c0_i32_0 = arith.constant 0 : i32
    %c0_i32_1 = arith.constant 0 : i32
    return %arg0, %c0_i32, %c0_i32_0 : i32, i32, i32
  }
}

</mosaic_0001>

<bundles_post_ra>
// kernel: tpu_custom_call.1
= control target key start
LH: loop header
LB: loop body
LE: loop exit
PB: predicated region body
PF: predicated region fallthrough
CT: control target
= control target key end

     0   :  { %10 = vsyncpa [#allocation5], 0  ;;  %s1094_s0 = inlined_call_operand.hbm [shape: f32[2,32,256], index: 0, kind: input, shape index: {}]   ;;  %s1095_s1 = inlined_call_operand.vmem [shape: f32[32,8], index: 1, kind: input, shape index: {}]   ;;  %s1096_s2 = inlined_call_operand.vmem [shape: f32[1,8], index: 2, kind: input, shape index: {}]   ;;  %s1097_s3 = inlined_call_operand.vmem [shape: f32[8,32], index: 3, kind: input, shape index: {}]   ;;  %s1098_s4 = inlined_call_operand.vmem [shape: f32[1,32], index: 4, kind: input, shape index: {}]   ;;  %s1099_s5 = inlined_call_operand.hbm [shape: f32[2,1,32], index: 5, kind: output, shape index: {}]  }
   0x1   :  { %12 = vsyncpa [#allocation5 + $0x1], 0 }
   0x2   :  { %13 = vsyncpa [#allocation6], 0 }
   0x3   :  { %15 = vsyncpa [#allocation6 + $0x1], 0  ;;  %s941_s18 = smov 0   ;;  %s943_s19 = smov 0  }
   0x4   :  { %s945_s20 = smov 0   ;;  %s947_s21 = smov 0  }
   0x5   :  { %s949_s22 = smov 0   ;;  %s951_s23 = smov 0  }
   0x6 LB: > { %s700_s24 = sadd.s32 4294967295, %s904_s23   ;;  %s701_s25 = sadd.s32 4294967294, %s904_s23   ;;  %s904_s23 = sphi %s951_s23, %s21_s23   ;;  %s900_s22 = sphi %s949_s22, %s1108_s22   ;;  %s896_s21 = sphi %s947_s21, %s1107_s21   ;;  %s892_s20 = sphi %s945_s20, %s1106_s20   ;;  %s888_s19 = sphi %s943_s19, %s1105_s19   ;;  %s884_s18 = sphi %s941_s18, %s1104_s18  }
   0x7   : > { %s33_s26 = sadd.s32 1, %s900_s22  ;;  %s42_s27 = sadd.s32 1, %s892_s20 }
   0x8   : > { %p35_p0 = scmp.ge.s32.totalorder %s33_s26, 2  ;;  %p49_p1 = scmp.ne.s32.totalorder %s892_s20, %s888_s19 }
   0x9   : > { %p50_p2 = scmp.eq.s32.totalorder %s904_s23, 0  ;;  %p55_p3 = scmp.ne.s32.totalorder %s888_s19, %s884_s18 }
   0xa   : > { %s1110_s26 = smov (%p35_p0, %s33_s26), 0  ;;  %p56_p5 = scmp.eq.s32.totalorder %s700_s24, 0 }
   0xb   : > { %p982_p4 = por %p50_p2, %p49_p1  ;;  %s37_s29 = ssub.s32 %s900_s22, %s1110_s26 }
   0xc   : > { %p163_p6 = scmp.eq.s32.totalorder %s700_s24, 1  ;;  %p40_p7 = scmp.eq.s32.totalorder %s37_s29, 0 }
   0xd   : > { %p988_p8 = por %p56_p5, %p55_p3  ;;  %p169_p10 = scmp.eq.s32.totalorder %s701_s25, 1 }
   0xe   : > { %p992_p9 = por %p163_p6, %p49_p1  ;;  %p703_p12 = scmp.ge.s32.totalorder %s904_s23, 2 }
   0xf   : > { %s997_s7 = scalar_select %p40_p7, %s892_s20, %s42_s27  }
  0x10   : > { %p999_p11 = por %p169_p10, %p55_p3  ;;  %p727_p13 = scmp.lt.s32.totalorder %s904_s23, 2 }
  0x11   : > { %s201_s9 = sand.u32 1, %s892_s20   ;;  %s714_s11 = sshll.u32 %s900_s22, 6 }
  0x12   : > { %s704_s10 = sshll.u32 %s201_s9, 6  ;;  %s212_s14 = scalar_lea.hbm %s1094_s0, %s714_s11 }
  0x13   : > { %s205_s15 = scalar_lea.vmem [#allocation4], %s704_s10  ;;  %s213_s17 = sshll.u32 %s212_s14, 4  ;;  %s214_s17 = int_to_ptr.hbm [resolvable:$true] %s213_s17 }
  0x14   : > { %s215_s16 = sshll.u32 %s205_s15, 4  ;;  %p720_p0 = pnand %p727_p13, %p982_p4  ;;  %s216_s16 = int_to_ptr.vmem [resolvable:$true] %s215_s16 }
  0x15   : > { %p707_p1 = scmp.ge.s32.totalorder %s904_s23, 1  ;;  %s202_s24 = scalar_lea.sflag [#allocation5], %s201_s9 }
  0x16   : > { %s906_s25 = smov 256   ;;  %s907_s27 = smov 16  }
  0x17   : > { %722 = dma.hbm_to_vmem [thread:$0]  (!%p720_p0), %s214_s17, 1024, %s216_s16, %s202_s24, %s906_s25, %s906_s25, %s907_s27  }
  0x18   : > { %p223_p2 = scmp.lt.s32.totalorder %s904_s23, 3 }
  0x1a   : > { %p224_p3 = pnand %p707_p1, %p223_p2 }
  0x1b   : > { %s1015_s29 = sand.u32 (!%p224_p3), 1, %s888_s19  }
  0x1c   : > { %227 = sbr.rel (%p224_p3) target bundleno = 697 (0x2b9), region = 40  ;;  %s708_s10 = sshll.u32 (!%p224_p3), %s1015_s29, 6 }
  0x1d   : > { %s230_s11 = scalar_lea.sflag (!%p224_p3), [#allocation5], %s1015_s29  ;;  %s233_s12 = scalar_lea.vmem (!%p224_p3), [#allocation4], %s708_s10 }
  0x21   : > { %875 = dma.done.wait (%p988_p8), %s230_s11, 1024  }
  0x22   : > { %877 = vsyncadd (%p988_p8), %s230_s11, 4294966272  ;;  %v261_v0 = vld [vmem:[%s233_s12] sm:$0xff]  ;;  %v262_v1 = vld [vmem:[%s233_s12 + $0x8] sm:$0xff]  ;;  %v908_v16 = vmov 0   ;;  %vm273_vm0 = vcmask 253952   ;;  %vm385_vm1 = vcmask 130112   ;;  %s619_s9 = scalar_lea.hbm %s1099_s5, %s896_s21 }
  0x23   : > { %v277_v2 = vadd.f32 %v262_v1, %v261_v0  ;;  %v265_v3 = vld [vmem:[%s233_s12 + $0x20] sm:$0xff]  ;;  %v266_v4 = vld [vmem:[%s233_s12 + $0x28] sm:$0xff]  ;;  %v400_v5 = vmax.f32 %v261_v0, %v262_v1  ;;  %v263_v7 = vld [vmem:[%s233_s12 + $0x10] sm:$0xff]  ;;  %782 = vset.pattern.permute.xlu2 %v908_v16  ;;  %783 = vset.pattern.permute.xlu0 %v908_v16  ;;  %vm389_vm2 = vcmask 195712   ;;  %vm393_vm3 = vcmask 261312   ;;  %s259_s13 = scalar_lea.vmem [#allocation7], %s1015_s29 }
  0x24   : > { %v283_v6 = vadd.f32 %v266_v4, %v265_v3  ;;  %v264_v8 = vld [vmem:[%s233_s12 + $0x18] sm:$0xff]  ;;  %v267_v9 = vld [vmem:[%s233_s12 + $0x30] sm:$0xff]  ;;  %v406_v14 = vmax.f32 %v265_v3, %v266_v4  ;;  %784 = vset.pattern.permute.xlu1 %v908_v16  ;;  %vm522_vm4 = vcmask 1040384   ;;  %vm534_vm5 = vcmask 261120   ;;  %s621_s14 = sshll.u32 %s259_s13, 4  ;;  %s623_s15 = sshll.u32 %s619_s9, 4  ;;  %s622_s14 = int_to_ptr.vmem [resolvable:$true] %s621_s14  ;;  %s624_s15 = int_to_ptr.hbm [resolvable:$true] %s623_s15 }
  0x25   : > { %278 = vadd.xlane.f32.xlu0 %v277_v2  ;;  %401 = vmax.xlane.f32.xlu2 %v400_v5  ;;  %v268_v10 = vld [vmem:[%s233_s12 + $0x38] sm:$0xff]  ;;  %v280_v11 = vadd.f32 %v264_v8, %v263_v7  ;;  %v403_v12 = vmax.f32 %v263_v7, %v264_v8  ;;  %vm562_vm6 = vcmask 64512   ;;  %s611_s21 = scalar_lea.sflag [#allocation6], %s1015_s29  ;;  %s836_s16 = sshra.s32 %s624_s15, 4  ;;  %s837_s16 = int_to_ptr.hbm [resolvable:$true] %s836_s16 }
  0x26   : > { %284 = vadd.xlane.f32.xlu1 %v283_v6  ;;  %v286_v13 = vadd.f32 %v268_v10, %v267_v9  ;;  %v409_v15 = vmax.f32 %v267_v9, %v268_v10  ;;  %s838_s17 = scalar_lea.hbm %s837_s16, 1  ;;  %s842_s27 = scalar_lea.hbm %s1099_s5, 2 }
  0x27   : > { %p839_p4 = scmp.ne.s32.totalorder %s837_s16, %s838_s17  ;;  %p843_p7 = scmp.lt.s32.totalorder %s837_s16, %s1099_s5 }
  0x28   : > { %p844_p8 = scmp.lt.s32.totalorder %s842_s27, %s838_s17 }
  0x29   : > { %p840_p5 = pnand %p839_p4, %p992_p9 }
  0x2a   : > { %p845_p10 = por %p844_p8, %p843_p7 }
  0x2b   : > { %p841_p6 = pneg %p840_p5 }
  0x2d   : > { %281 = vadd.xlane.f32.xlu0 %v280_v11  ;;  %404 = vmax.xlane.f32.xlu2 %v403_v12  ;;  %p846_p13 = pnand %p845_p10, %p841_p6 }
  0x2e   : > { %287 = vadd.xlane.f32.xlu1 %v286_v13 }
  0x35   : > { %407 = vmax.xlane.f32.xlu0 %v406_v14 }
  0x36   : > { %410 = vmax.xlane.f32.xlu1 %v409_v15 }
  0x98   : > { %v279_v17 = vpop.xlane.xlu0 %278  ;;  %v402_v56 = vpop.xlane.xlu2 %401 }
  0x99   : > { %v293_v18 = vperm.slane %v279_v17, 0  ;;  %v294_v19 = vperm.slane %v279_v17, 1  ;;  %v295_v20 = vperm.slane %v279_v17, 2  ;;  %v296_v21 = vperm.slane %v279_v17, 3  ;;  %v285_v36 = vpop.xlane.xlu1 %284 }
  0x9a   : > { %v297_v22 = vperm.slane %v279_v17, 4  ;;  %v298_v23 = vperm.slane %v279_v17, 5  ;;  %v299_v24 = vperm.slane %v279_v17, 6  ;;  %v300_v25 = vperm.slane %v279_v17, 7 }
  0x9b   : > { %325 = vst [vmem:[#allocation1] ss:$9 sm:$0xff] %v293_v18  ;;  %v309_v37 = vperm.slane %v285_v36, 0  ;;  %v310_v38 = vperm.slane %v285_v36, 1  ;;  %v311_v39 = vperm.slane %v285_v36, 2  ;;  %v312_v41 = vperm.slane %v285_v36, 3 }
  0x9c   : > { %327 = vst [vmem:[#allocation1 + $0x1] ss:$9 sm:$0xff] %v294_v19  ;;  %v313_v42 = vperm.slane %v285_v36, 4  ;;  %v314_v43 = vperm.slane %v285_v36, 5  ;;  %v315_v44 = vperm.slane %v285_v36, 6  ;;  %v316_v45 = vperm.slane %v285_v36, 7 }
  0x9d   : > { %329 = vst [vmem:[#allocation1 + $0x2] ss:$9 sm:$0xff] %v295_v20  ;;  %v416_v57 = vperm.slane %v402_v56, 0  ;;  %v417_v58 = vperm.slane %v402_v56, 1  ;;  %v418_v59 = vperm.slane %v402_v56, 2  ;;  %v419_v61 = vperm.slane %v402_v56, 3 }
  0x9e   : > { %331 = vst [vmem:[#allocation1 + $0x3] ss:$9 sm:$0xff] %v296_v21  ;;  %v420_v62 = vperm.slane %v402_v56, 4  ;;  %v421_v63 = vperm.slane %v402_v56, 5  ;;  %v422_v0 = vperm.slane %v402_v56, 6  ;;  %v423_v1 = vperm.slane %v402_v56, 7 }
  0x9f   : > { %333 = vst [vmem:[#allocation1 + $0x4] ss:$9 sm:$0xff] %v297_v22  ;;  %v380_v36 = vlaneseq  ;;  %v525_v56 = vld [vmem:[%s1095_s1 + $0x8] sm:$0xff] }
  0xa0   : > { %335 = vst [vmem:[#allocation1 + $0x5] ss:$9 sm:$0xff] %v298_v23  ;;  %v282_v26 = vpop.xlane.xlu0 %281  ;;  %v405_v2 = vpop.xlane.xlu2 %404 }
  0xa1   : > { %337 = vst [vmem:[#allocation1 + $0x6] ss:$9 sm:$0xff] %v299_v24  ;;  %v301_v27 = vperm.slane %v282_v26, 0  ;;  %v302_v28 = vperm.slane %v282_v26, 1  ;;  %v303_v29 = vperm.slane %v282_v26, 2  ;;  %v304_v31 = vperm.slane %v282_v26, 3  ;;  %v288_v46 = vpop.xlane.xlu1 %287 }
  0xa2   : > { %339 = vst [vmem:[#allocation1 + $0x7] ss:$9 sm:$0xff] %v300_v25  ;;  %v305_v32 = vperm.slane %v282_v26, 4  ;;  %v306_v33 = vperm.slane %v282_v26, 5  ;;  %v307_v34 = vperm.slane %v282_v26, 6  ;;  %v308_v35 = vperm.slane %v282_v26, 7 }
  0xa3   : > { %v317_v47 = vperm.slane %v288_v46, 0  ;;  %v318_v48 = vperm.slane %v288_v46, 1  ;;  %v319_v49 = vperm.slane %v288_v46, 2  ;;  %v320_v51 = vperm.slane %v288_v46, 3 }
  0xa4   : > { %v321_v52 = vperm.slane %v288_v46, 4  ;;  %v322_v53 = vperm.slane %v288_v46, 5  ;;  %v323_v54 = vperm.slane %v288_v46, 6  ;;  %v324_v55 = vperm.slane %v288_v46, 7 }
  0xa5   : > { %v424_v3 = vperm.slane %v405_v2, 0  ;;  %v425_v4 = vperm.slane %v405_v2, 1  ;;  %v426_v5 = vperm.slane %v405_v2, 2  ;;  %v427_v7 = vperm.slane %v405_v2, 3 }
  0xa6   : > { %v428_v8 = vperm.slane %v405_v2, 4  ;;  %v429_v9 = vperm.slane %v405_v2, 5  ;;  %v430_v10 = vperm.slane %v405_v2, 6  ;;  %v431_v11 = vperm.slane %v405_v2, 7 }
  0xa8   : > { %v408_v12 = vpop.xlane.xlu0 %407 }
  0xa9   : > { %v340_v30 = vld [vmem:[#allocation1] sm:$0xff]  ;;  %v432_v13 = vperm.slane %v408_v12, 0  ;;  %v433_v14 = vperm.slane %v408_v12, 1  ;;  %v434_v15 = vperm.slane %v408_v12, 2  ;;  %v435_v16 = vperm.slane %v408_v12, 3  ;;  %v411_v22 = vpop.xlane.xlu1 %410 }
  0xaa   : > { %341 = vst [vmem:[#allocation1] ss:$9 sm:$0xff] %v301_v27  ;;  %369 = vperm.xlu2 %782, %v340_v30   ;;  %v436_v18 = vperm.slane %v408_v12, 4  ;;  %v437_v19 = vperm.slane %v408_v12, 5  ;;  %v438_v20 = vperm.slane %v408_v12, 6  ;;  %v439_v21 = vperm.slane %v408_v12, 7 }
  0xab   : > { %342 = vst [vmem:[#allocation1 + $0x1] ss:$9 sm:$0xff] %v302_v28  ;;  %v440_v23 = vperm.slane %v411_v22, 0  ;;  %v441_v24 = vperm.slane %v411_v22, 1  ;;  %v442_v25 = vperm.slane %v411_v22, 2  ;;  %v443_v26 = vperm.slane %v411_v22, 3 }
  0xac   : > { %343 = vst [vmem:[#allocation1 + $0x2] ss:$9 sm:$0xff] %v303_v29  ;;  %v444_v28 = vperm.slane %v411_v22, 4  ;;  %v445_v29 = vperm.slane %v411_v22, 5  ;;  %v446_v30 = vperm.slane %v411_v22, 6 }
  0xad   : > { %344 = vst [vmem:[#allocation1 + $0x3] ss:$9 sm:$0xff] %v304_v31  ;;  %v447_v31 = vperm.slane %v411_v22, 7 }
  0xae   : > { %345 = vst [vmem:[#allocation1 + $0x4] ss:$9 sm:$0xff] %v305_v32 }
  0xaf   : > { %346 = vst [vmem:[#allocation1 + $0x5] ss:$9 sm:$0xff] %v306_v33  ;;  %v909_v33 = vmov 0.0  }
  0xb0   : > { %347 = vst [vmem:[#allocation1 + $0x6] ss:$9 sm:$0xff] %v307_v34 }
  0xb1   : > { %348 = vst [vmem:[#allocation1 + $0x7] ss:$9 sm:$0xff] %v308_v35 }
  0xb2   : > { %274 = vst.msk [vmem:[#allocation2] sm:$0x1] %vm273_vm0, %v909_v33 }
  0xb8   : > { %v349_v40 = vld [vmem:[#allocation1] sm:$0xff] }
  0xb9   : > { %350 = vst [vmem:[#allocation1] ss:$9 sm:$0xff] %v309_v37  ;;  %372 = vperm.xlu0 %783, %v349_v40   ;;  %v381_v37 = vand.u32 127, %v380_v36 }
  0xba   : > { %351 = vst [vmem:[#allocation1 + $0x1] ss:$9 sm:$0xff] %v310_v38 }
  0xbb   : > { %352 = vst [vmem:[#allocation1 + $0x2] ss:$9 sm:$0xff] %v311_v39  ;;  %v383_v38 = vadd.s32 4294967288, %v381_v37 }
  0xbc   : > { %353 = vst [vmem:[#allocation1 + $0x3] ss:$9 sm:$0xff] %v312_v41 }
  0xbd   : > { %354 = vst [vmem:[#allocation1 + $0x4] ss:$9 sm:$0xff] %v313_v42  ;;  %v387_v42 = vadd.s32 4294967280, %v381_v37 }
  0xbe   : > { %355 = vst [vmem:[#allocation1 + $0x5] ss:$9 sm:$0xff] %v314_v43 }
  0xbf   : > { %356 = vst [vmem:[#allocation1 + $0x6] ss:$9 sm:$0xff] %v315_v44  ;;  %v391_v44 = vadd.s32 4294967272, %v381_v37 }
  0xc0   : > { %357 = vst [vmem:[#allocation1 + $0x7] ss:$9 sm:$0xff] %v316_v45 }
  0xc7   : > { %v358_v50 = vld [vmem:[#allocation1] sm:$0xff] }
  0xc8   : > { %359 = vst [vmem:[#allocation1] ss:$9 sm:$0xff] %v317_v47  ;;  %375 = vperm.xlu2 %782, %v358_v50  }
  0xc9   : > { %360 = vst [vmem:[#allocation1 + $0x1] ss:$9 sm:$0xff] %v318_v48  ;;  %v276_v48 = vld [vmem:[#allocation2] sm:$0x1] }
  0xca   : > { %361 = vst [vmem:[#allocation1 + $0x2] ss:$9 sm:$0xff] %v319_v49 }
  0xcb   : > { %362 = vst [vmem:[#allocation1 + $0x3] ss:$9 sm:$0xff] %v320_v51 }
  0xcc   : > { %363 = vst [vmem:[#allocation1 + $0x4] ss:$9 sm:$0xff] %v321_v52  ;;  %v910_v52 = vmov -inf  }
  0xcd   : > { %364 = vst [vmem:[#allocation1 + $0x5] ss:$9 sm:$0xff] %v322_v53 }
  0xce   : > { %365 = vst [vmem:[#allocation1 + $0x6] ss:$9 sm:$0xff] %v323_v54  ;;  %v527_v54 = vld [vmem:[%s1095_s1 + $0x18] sm:$0xff] }
  0xcf   : > { %366 = vst [vmem:[#allocation1 + $0x7] ss:$9 sm:$0xff] %v324_v55  ;;  %v526_v55 = vld [vmem:[%s1095_s1 + $0x10] sm:$0xff]  ;;  %550 = vmatpush.msra.mxu0 %v527_v54 }
  0xd0   : > { %275 = vst.msk [vmem:[#allocation3] sm:$0x1] %vm273_vm0, %v910_v52 }
  0xd1   : > { %551 = vmatpush.msra.mxu0 %v526_v55 }
  0xd3   : > { %552 = vmatpush.msra.mxu0 %v525_v56 }
  0xd6   : > { %v367_v60 = vld [vmem:[#allocation1] sm:$0xff] }
  0xd7   : > { %448 = vst [vmem:[#allocation1] ss:$9 sm:$0xff] %v416_v57  ;;  %v524_v57 = vld [vmem:[%s1095_s1] sm:$0xff] }
  0xd8   : > { %450 = vst [vmem:[#allocation1 + $0x1] ss:$9 sm:$0xff] %v417_v58  ;;  %553 = vmatpush.msra.mxu0 %v524_v57 }
  0xd9   : > { %452 = vst [vmem:[#allocation1 + $0x2] ss:$9 sm:$0xff] %v418_v59 }
  0xda   : > { %454 = vst [vmem:[#allocation1 + $0x3] ss:$9 sm:$0xff] %v419_v61 }
  0xdb   : > { %456 = vst [vmem:[#allocation1 + $0x4] ss:$9 sm:$0xff] %v420_v62 }
  0xdc   : > { %458 = vst [vmem:[#allocation1 + $0x5] ss:$9 sm:$0xff] %v421_v63 }
  0xdd   : > { %460 = vst [vmem:[#allocation1 + $0x6] ss:$9 sm:$0xff] %v422_v0 }
  0xde   : > { %462 = vst [vmem:[#allocation1 + $0x7] ss:$9 sm:$0xff] %v423_v1  ;;  %v399_v1 = vld [vmem:[#allocation3] sm:$0x1] }
  0xe5   : > { %v463_v6 = vld [vmem:[#allocation1] sm:$0xff] }
  0xe6   : > { %464 = vst [vmem:[#allocation1] ss:$9 sm:$0xff] %v424_v3  ;;  %492 = vperm.xlu1 %784, %v463_v6  }
  0xe7   : > { %465 = vst [vmem:[#allocation1 + $0x1] ss:$9 sm:$0xff] %v425_v4 }
  0xe8   : > { %466 = vst [vmem:[#allocation1 + $0x2] ss:$9 sm:$0xff] %v426_v5 }
  0xe9   : > { %467 = vst [vmem:[#allocation1 + $0x3] ss:$9 sm:$0xff] %v427_v7 }
  0xea   : > { %468 = vst [vmem:[#allocation1 + $0x4] ss:$9 sm:$0xff] %v428_v8 }
  0xeb   : > { %469 = vst [vmem:[#allocation1 + $0x5] ss:$9 sm:$0xff] %v429_v9 }
  0xec   : > { %470 = vst [vmem:[#allocation1 + $0x6] ss:$9 sm:$0xff] %v430_v10  ;;  %v529_v10 = vld [vmem:[%s1097_s3] sm:$0xff] }
  0xed   : > { %471 = vst [vmem:[#allocation1 + $0x7] ss:$9 sm:$0xff] %v431_v11  ;;  %581 = vmatpush.msra.mxu1 %v529_v10  ;;  %v786_v11 = vld [vmem:[%s1096_s2] ss:$0 sm:$0xff] }
  0xf4   : > { %v472_v17 = vld [vmem:[#allocation1] sm:$0xff] }
  0xf5   : > { %495 = vperm.xlu2 %782, %v472_v17   ;;  %473 = vst [vmem:[#allocation1] ss:$9 sm:$0xff] %v432_v13 }
  0xf6   : > { %474 = vst [vmem:[#allocation1 + $0x1] ss:$9 sm:$0xff] %v433_v14 }
  0xf7   : > { %475 = vst [vmem:[#allocation1 + $0x2] ss:$9 sm:$0xff] %v434_v15  ;;  %v787_v15 = vld [vmem:[%s1098_s4] ss:$0 sm:$0xff] }
  0xf8   : > { %476 = vst [vmem:[#allocation1 + $0x3] ss:$9 sm:$0xff] %v435_v16 }
  0xf9   : > { %477 = vst [vmem:[#allocation1 + $0x4] ss:$9 sm:$0xff] %v436_v18 }
  0xfa   : > { %478 = vst [vmem:[#allocation1 + $0x5] ss:$9 sm:$0xff] %v437_v19 }
  0xfb   : > { %479 = vst [vmem:[#allocation1 + $0x6] ss:$9 sm:$0xff] %v438_v20 }
  0xfc   : > { %480 = vst [vmem:[#allocation1 + $0x7] ss:$9 sm:$0xff] %v439_v21 }
  0xfd   : > { %378 = vperm.xlu2 %782, %v367_v60  }
 0x103   : > { %v481_v27 = vld [vmem:[#allocation1] sm:$0xff] }
 0x104   : > { %498 = vperm.xlu1 %784, %v481_v27   ;;  %482 = vst [vmem:[#allocation1] ss:$9 sm:$0xff] %v440_v23  ;;  %v370_v34 = vpop.permute.xlu2 %369 }
 0x105   : > { %483 = vst [vmem:[#allocation1 + $0x1] ss:$9 sm:$0xff] %v441_v24  ;;  %v382_v43 = vperm.slane %v370_v34, %v381_v37 }
 0x106   : > { %484 = vst [vmem:[#allocation1 + $0x2] ss:$9 sm:$0xff] %v442_v25 }
 0x107   : > { %485 = vst [vmem:[#allocation1 + $0x3] ss:$9 sm:$0xff] %v443_v26 }
 0x108   : > { %486 = vst [vmem:[#allocation1 + $0x4] ss:$9 sm:$0xff] %v444_v28 }
 0x109   : > { %487 = vst [vmem:[#allocation1 + $0x5] ss:$9 sm:$0xff] %v445_v29 }
 0x10a   : > { %488 = vst [vmem:[#allocation1 + $0x6] ss:$9 sm:$0xff] %v446_v30 }
 0x10b   : > { %489 = vst [vmem:[#allocation1 + $0x7] ss:$9 sm:$0xff] %v447_v31 }
 0x112   : > { %v490_v32 = vld [vmem:[#allocation1] sm:$0xff] }
 0x113   : > { %501 = vperm.xlu1 %784, %v490_v32  }
 0x122   : > { %v376_v35 = vpop.permute.xlu2 %375 }
 0x123   : > { %v388_v46 = vperm.slane %v376_v35, %v387_v42 }
 0x12b   : > { %v373_v39 = vpop.permute.xlu0 %372 }
 0x12c   : > { %v384_v41 = vperm.slane %v373_v39, %v383_v38 }
 0x12e   : > { %v386_v45 = vsel %vm385_vm1, %v384_v41, %v382_v43 }
 0x12f   : > { %v390_v50 = vsel %vm389_vm2, %v388_v46, %v386_v45 }
 0x14f   : > { %v496_v40 = vpop.permute.xlu2 %495 }
 0x150   : > { %v504_v62 = vperm.slane %v496_v40, %v383_v38 }
 0x157   : > { %v379_v47 = vpop.permute.xlu2 %378 }
 0x158   : > { %v392_v49 = vperm.slane %v379_v47, %v391_v44  ;;  %v493_v58 = vpop.permute.xlu1 %492 }
 0x159   : > { %v503_v60 = vperm.slane %v493_v58, %v381_v37 }
 0x15a   : > { %v394_v51 = vsel %vm393_vm3, %v392_v49, %v390_v50 }
 0x15b   : > { %v396_v53 = vadd.f32 %v394_v51, %v276_v48  ;;  %v505_v0 = vsel %vm385_vm1, %v504_v62, %v503_v60 }
 0x15d   : > { %398 = vst.msk [vmem:[#allocation2] sm:$0x1] %vm273_vm0, %v396_v53 }
 0x164   : > { %v516_v6 = vld [vmem:[#allocation2] sm:$0x1] }
 0x165   : > { %v517_v7 = vmul.f32 0.00390625, %v516_v6 }
 0x176   : > { %v499_v59 = vpop.permute.xlu1 %498 }
 0x177   : > { %v506_v61 = vperm.slane %v499_v59, %v387_v42 }
 0x179   : > { %v507_v3 = vsel %vm389_vm2, %v506_v61, %v505_v0 }
 0x185   : > { %v502_v63 = vpop.permute.xlu1 %501 }
 0x186   : > { %v508_v2 = vperm.slane %v502_v63, %v391_v44 }
 0x188   : > { %v509_v4 = vsel %vm393_vm3, %v508_v2, %v507_v3 }
 0x189   : > { %v511_v5 = vmax.f32 %v399_v1, %v509_v4 }
 0x18b   : > { %512 = vst.msk [vmem:[#allocation3] sm:$0x1] %vm273_vm0, %v511_v5 }
 0x192   : > { %v785_v8 = vld [vmem:[#allocation3] ss:$0 sm:$0xff] }
 0x193   : > { %v523_v9 = vsel %vm522_vm4, %v517_v7, %v785_v8 }
 0x194   : > { %709 = vmatmul.msk.f32.vlgmr.msra.gmra.mxu0 %vm534_vm5, %v523_v9 }
 0x211   : > { %v555_v12 = vpop.f32.mrf.mxu0 }
 0x212   : > { %v556_v13 = vadd.f32 %v786_v11, %v555_v12 }
 0x214   : > { %v558_v14 = vmax.f32 %v556_v13, 0.0 }
 0x216   : > { %710 = vmatmul.msk.f32.vlgmr.msra.gmra.mxu1 %vm562_vm6, %v558_v14 }
 0x293   : > { %v583_v16 = vpop.f32.mrf.mxu1 }
 0x294   : > { %v584_v17 = vadd.f32 %v787_v15, %v583_v16 }
 0x296   : > { %v587_v18 = vrot.slane %v584_v17, 1 }
 0x298   : > { %v589_v19 = vadd.f32 %v587_v18, %v584_v17 }
 0x29a   : > { %v711_v20 = vmul.f32 -1.442695, %v589_v19 }
 0x29c   : > { %788 = vpow2.f32 %v711_v20 }
 0x2a2   : > { %v789_v21 = vpop.eup %788 }
 0x2a3   : > { %v593_v22 = vadd.f32 1.0, %v789_v21 }
 0x2a5   : > { %790 = vrcp.f32 %v593_v22  ;;  %v605_v26 = vand.u32 2147483648, %v593_v22  ;;  %v603_v28 = vand.u32 2147483647, %v593_v22  ;;  %vm599_vm8 = vweird.f32 %v593_v22 }
 0x2a7   : > { %v606_v30 = vor.u32 1.1754944e-38, %v605_v26  ;;  %vm604_vm10 = vcmp.eq.f32.partialorder %v603_v28, 8.507059e+37 }
 0x2ab   : > { %v791_v23 = vpop.eup %790 }
 0x2ac   : > { %v595_v24 = vmul.f32 %v791_v23, %v593_v22  ;;  %vm600_vm7 = vweird.f32 %v791_v23 }
 0x2ad   : > { %vm601_vm9 = vmor %vm599_vm8, %vm600_vm7 }
 0x2ae   : > { %v596_v25 = vsub.f32 1.0, %v595_v24 }
 0x2b0   : > { %v597_v27 = vmul.f32 %v791_v23, %v596_v25 }
 0x2b2   : > { %v598_v29 = vadd.f32 %v791_v23, %v597_v27 }
 0x2b4   : > { %v602_v31 = vsel %vm601_vm9, %v791_v23, %v598_v29 }
 0x2b5   : > { %v607_v32 = vsel %vm604_vm10, %v606_v30, %v602_v31 }
 0x2b6   : > { %609 = vst.msk [vmem:[%s259_s13] sm:$0x1] %vm273_vm0, %v607_v32 }
 0x2b7   : > { %849 = shalt.err (!%p846_p13)
}
 0x2b8   : > { %717 = dma.vmem_to_hbm [thread:$0]  (%p992_p9), %s622_s14, 16, %s624_s15, %s611_s21  }
 0x2b9 PF: > { %s635_s29 = sand.u32 1, %s884_s18   ;;  %p724_p0 = pnand %p703_p12, %p999_p11 }
 0x2ba   : > { %s636_s12 = scalar_lea.sflag [#allocation6], %s635_s29 }
 0x2bb   : > { %p725_p1 = pneg %p724_p0 }
 0x2bd   : > { %879 = dma.done.wait (%p725_p1), %s636_s12, 16  }
 0x2be   : > { %881 = vsyncadd (%p725_p1), %s636_s12, 4294967280  ;;  %s21_s23 = sadd.s32 1, %s904_s23   ;;  %s1104_s18 = smov %s888_s19 }
 0x2bf   : > { %p18_p2 = scmp.ge.s32.totalorder %s21_s23, 4   ;;  %s1105_s19 = smov %s892_s20 }
 0x2c0   : > { %s1106_s20 = smov %s997_s7  ;;  %s1107_s21 = smov %s900_s22 }
 0x2c1   : > { %s1108_s22 = smov %s1110_s26  ;;  %20 = sbr.rel (!%p18_p2) target bundleno = 6 (0x6), region = 107 }
 0x2c6   :  { %641 = vsyncpa [#allocation5], 1 }
 0x2c7   :  { %643 = vsyncpa [#allocation5 + $0x1], 1 }
 0x2c8   :  { %644 = vsyncpa [#allocation6], 1 }
 0x2c9   :  { %646 = vsyncpa [#allocation6 + $0x1], 1 }

</bundles_post_ra>
